<compile_context>
chip_gen: v6e
topology: v6e:2x2x1
jax: 0.10.0
libtpu: 0.0.40
codegen_flags: <defaults>
</compile_context>

<pallas_src>
import jax
import jax.numpy as jnp
from jax.experimental import pallas as pl
from jax.experimental.pallas import tpu as pltpu

# ---- model hyperparameters (attributes of the concrete module) ----
F = 16                 # input features (Conv1d input length, in_channels = 1)
K = 3                  # self.kernel_size
C = 4                  # self.out_channels
FC1 = 32               # self.fc1_size
L_OUT = F - K + 1      # 'valid' conv output length
FLAT = C * L_OUT       # flattened conv features (torch channel-major order)

TB_MAX = 2048          # upper bound on the batch tile (lane axis)


def cnn_forward_kernel(x_ref, wband_ref, bflat_ref, fc1_w_ref, fc1_b_ref,
                       fc2_w_ref, fc2_b_ref, out_ref):
    """One batch tile; batch on the lane axis inside the kernel.

    x_ref     : (TB, F)      VMEM f32   natural (batch, feature) layout
    wband_ref : (FLAT, F)    VMEM bf16  banded conv weights (row = c*L_OUT + l)
    bflat_ref : (FLAT, 1)    VMEM f32   conv bias column
    fc1_w_ref : (FC1, FLAT)  VMEM bf16
    fc1_b_ref : (FC1, 1)     VMEM f32
    fc2_w_ref : (1, FC1)     VMEM bf16
    fc2_b_ref : (1, 1)       VMEM f32
    out_ref   : (1, TB)      VMEM f32   lane-dense logits
    """
    # XLU transpose (slack slot) + bf16 cast of the MXU operand; f32 accumulate.
    xT = jnp.transpose(x_ref[...]).astype(jnp.bfloat16)              # (F, TB)

    # Conv1d (banded matmul) + bias + ReLU.
    h = jnp.maximum(
        jnp.dot(wband_ref[...], xT, preferred_element_type=jnp.float32)
        + bflat_ref[...], 0.0)                                        # (FLAT, TB)

    # fc1 + ReLU.
    a1 = jnp.maximum(
        jnp.dot(fc1_w_ref[...], h.astype(jnp.bfloat16),
                preferred_element_type=jnp.float32)
        + fc1_b_ref[...], 0.0)                                        # (FC1, TB)

    # fc2 -> lane-dense (1, TB) logits.
    out_ref[...] = (
        jnp.dot(fc2_w_ref[...], a1.astype(jnp.bfloat16),
                preferred_element_type=jnp.float32)
        + fc2_b_ref[...])
    # TODO(synk): if a bundle dump ever shows the vst slot binding (h/a1 fully
    # materialized in VMEM), chunk the lane axis with an unrolled fori_loop.


def _banded_conv_weight(conv_w):
    """W_band[c*L_OUT + l, f] = conv_w[c, f - l] if 0 <= f - l < K else 0."""
    l_idx = jnp.arange(L_OUT)
    f_idx = jnp.arange(F)
    k = f_idx[None, :] - l_idx[:, None]                       # (L_OUT, F)
    valid = ((k >= 0) & (k < K)).astype(conv_w.dtype)
    band = conv_w[:, jnp.clip(k, 0, K - 1)] * valid[None]     # (C, L_OUT, F)
    return band.reshape(FLAT, F)


def prepare_params(conv_w, conv_b, fc1_w, fc1_b, fc2_w, fc2_b):
    """One-time parameter packing (hoisted out of the per-call path)."""
    wband = _banded_conv_weight(conv_w).astype(jnp.bfloat16)          # (FLAT, F)
    bflat = jnp.repeat(conv_b, L_OUT).reshape(FLAT, 1).astype(jnp.float32)
    fc1_wb = fc1_w.astype(jnp.bfloat16)                               # (FC1, FLAT)
    fc1_bc = fc1_b.reshape(FC1, 1).astype(jnp.float32)
    fc2_row = fc2_w.reshape(1, FC1).astype(jnp.bfloat16)
    fc2_b2 = fc2_b.reshape(1, 1).astype(jnp.float32)
    return wband, bflat, fc1_wb, fc1_bc, fc2_row, fc2_b2


def _pick_tb(batch):
    """256-aligned batch tile: large enough to amortize per-step overhead,
    >= 2 grid blocks when the batch allows (v7x has 2 TensorCores)."""
    target = -(-batch // 2)                        # ceil(B / 2)
    tb = ((max(target, 256) + 255) // 256) * 256
    return min(tb, TB_MAX)


def _vmem_limit_bytes(tb, x_itemsize):
    """Scoped-VMEM budget from the actual footprint (+2x headroom), capped so
    it is valid on v7x's 64 MiB physical VMEM."""
    blk_in = 2 * tb * F * x_itemsize                 # x tile, double-buffered
    blk_out = 2 * tb * 4                             # logits tile, double-buffered
    weights = 2 * ((FLAT * F + FC1 * FLAT + FC1) * 2 + (FLAT + FC1 + 1) * 4)
    interm = tb * (F * 2 + FLAT * (4 + 2) + FC1 * (4 + 2) + 4)
    budget = blk_in + blk_out + weights + interm
    return int(min(48 * 1024 * 1024, max(4 * 1024 * 1024, 2 * budget)))


@jax.jit
def cnn_anomaly_forward(x, wband, bflat, fc1_w, fc1_b, fc2_w, fc2_b):
    """x: (B, F) float32 (bf16 also fine) -> (B, 1) float32 logits."""
    B = x.shape[0]
    tb = _pick_tb(B)
    n_blocks = pl.cdiv(B, tb)
    Bp = n_blocks * tb
    if Bp != B:                                      # cheap row-pad only
        x = jnp.pad(x, ((0, Bp - B), (0, 0)))

    flops_per_sample = 2 * (FLAT * F + FC1 * FLAT + FC1)
    cost = pl.CostEstimate(
        flops=Bp * flops_per_sample,
        transcendentals=0,
        bytes_accessed=Bp * (F * x.dtype.itemsize + 4) + 8 * 1024)

    logits_t = pl.pallas_call(
        cnn_forward_kernel,
        out_shape=jax.ShapeDtypeStruct((1, Bp), jnp.float32),
        grid=(n_blocks,),
        in_specs=[
            pl.BlockSpec((tb, F), lambda i: (i, 0)),       # x tile, natural layout
            pl.BlockSpec((FLAT, F), lambda i: (0, 0)),     # weights stay resident
            pl.BlockSpec((FLAT, 1), lambda i: (0, 0)),
            pl.BlockSpec((FC1, FLAT), lambda i: (0, 0)),
            pl.BlockSpec((FC1, 1), lambda i: (0, 0)),
            pl.BlockSpec((1, FC1), lambda i: (0, 0)),
            pl.BlockSpec((1, 1), lambda i: (0, 0)),
        ],
        out_specs=pl.BlockSpec((1, tb), lambda i: (0, i)), # lane-dense logits
        compiler_params=pltpu.CompilerParams(
            dimension_semantics=("parallel",),             # v7x: shard across 2 TCs
            vmem_limit_bytes=_vmem_limit_bytes(tb, x.dtype.itemsize)),
        cost_estimate=cost,
    )(x, wband, bflat, fc1_w, fc1_b, fc2_w, fc2_b)

    return logits_t[0, :B].reshape(B, 1)                   # (B, 1) logits


# ----------------------------- references ---------------------------------
def reference_forward_f32(x, conv_w, conv_b, fc1_w, fc1_b, fc2_w, fc2_b):
    """Pure-JAX f32 replica of the PyTorch forward semantics."""
    B = x.shape[0]
    cols = jnp.stack([x[:, k:k + L_OUT] for k in range(K)], axis=1)   # (B, K, L_OUT)
    conv = jnp.einsum('ck,bkl->bcl', conv_w, cols) + conv_b[None, :, None]
    h = jnp.maximum(conv, 0.0).reshape(B, FLAT)                       # torch .flatten(1)
    z1 = jnp.maximum(h @ fc1_w.T + fc1_b, 0.0)
    return z1 @ fc2_w.reshape(1, FC1).T + fc2_b                       # (B, 1)


def reference_forward_matched(x, wband, bflat, fc1_w, fc1_b, fc2_w, fc2_b):
    """Same math at the same precision (bf16 operands, f32 acc) as the kernel."""
    xT = x.T.astype(jnp.bfloat16)
    h = jnp.maximum(
        jnp.dot(wband, xT, preferred_element_type=jnp.float32) + bflat, 0.0)
    a1 = jnp.maximum(
        jnp.dot(fc1_w, h.astype(jnp.bfloat16),
                preferred_element_type=jnp.float32) + fc1_b, 0.0)
    out = jnp.dot(fc2_w, a1.astype(jnp.bfloat16),
                  preferred_element_type=jnp.float32) + fc2_b
    return out.T                                                      # (B, 1)


def init_params(key):
    """Deterministic init mimicking torch's default uniform(-1/sqrt(fan_in), +)."""
    k1, k2, k3, k4, k5, k6 = jax.random.split(key, 6)
    conv_bound = 1.0 / jnp.sqrt(1.0 * K)
    fc1_bound = 1.0 / jnp.sqrt(1.0 * FLAT)
    fc2_bound = 1.0 / jnp.sqrt(1.0 * FC1)
    conv_w = jax.random.uniform(k1, (C, K), jnp.float32, -conv_bound, conv_bound)
    conv_b = jax.random.uniform(k2, (C,), jnp.float32, -conv_bound, conv_bound)
    fc1_w = jax.random.uniform(k3, (FC1, FLAT), jnp.float32, -fc1_bound, fc1_bound)
    fc1_b = jax.random.uniform(k4, (FC1,), jnp.float32, -fc1_bound, fc1_bound)
    fc2_w = jax.random.uniform(k5, (1, FC1), jnp.float32, -fc2_bound, fc2_bound)
    fc2_b = jax.random.uniform(k6, (1,), jnp.float32, -fc2_bound, fc2_bound)
    return conv_w, conv_b, fc1_w, fc1_b, fc2_w, fc2_b


if __name__ == "__main__":
    key = jax.random.PRNGKey(0)
    kx1, kx2, kp = jax.random.split(key, 3)

    raw_params = init_params(kp)
    prep = prepare_params(*raw_params)              # hoisted packing, done once

    # Small batch consistent with the module's tabular input (F=16 features).
    x_small = jax.random.normal(kx1, (4, F), jnp.float32)
    logits_small = jax.block_until_ready(cnn_anomaly_forward(x_small, *prep))
    assert logits_small.shape == (4, 1)

    # Larger batch: exercises multiple grid blocks and the row-pad path.
    B_big = 640                                     # not a multiple of the tile
    x_big = jax.random.normal(kx2, (B_big, F), jnp.float32)
    logits_big = jax.block_until_ready(cnn_anomaly_forward(x_big, *prep))
    assert logits_big.shape == (B_big, 1)

    for x_chk, logits in ((x_small, logits_small), (x_big, logits_big)):
        ref_match = reference_forward_matched(x_chk, *prep)
        ref_f32 = reference_forward_f32(x_chk, *raw_params)
        assert jnp.allclose(logits, ref_match, atol=2e-3, rtol=2e-3), (
            float(jnp.max(jnp.abs(logits - ref_match))))
        assert jnp.allclose(logits, ref_f32, atol=6e-2, rtol=6e-2), (
            float(jnp.max(jnp.abs(logits - ref_f32))))

    # predict() applies sigmoid / thresholding outside the network; the kernel
    # returns logits, matching the module's BCEWithLogitsLoss forward contract.
    print("KERNEL_OK")
</pallas_src>

<mosaic_0001>
module attributes {stable_mosaic.version = 11 : i64} {
  func.func @cnn_forward_kernel(%arg0: i32, %arg1: memref<256x16xf32, #tpu.memory_space<vmem>>, %arg2: memref<56x16xbf16, #tpu.memory_space<vmem>>, %arg3: memref<56x1xf32, #tpu.memory_space<vmem>>, %arg4: memref<32x56xbf16, #tpu.memory_space<vmem>>, %arg5: memref<32x1xf32, #tpu.memory_space<vmem>>, %arg6: memref<1x32xbf16, #tpu.memory_space<vmem>>, %arg7: memref<1x1xf32, #tpu.memory_space<vmem>>, %arg8: memref<1x256xf32, #tpu.memory_space<vmem>>) attributes {dimension_semantics = [#tpu.dimension_semantics<parallel>], iteration_bounds = array<i64: 1>, scalar_prefetch = 0 : i64, scratch_operands = 0 : i64, tpu.core_type = #tpu.core_type<tc>, window_params = [{transform_indices = @transform_0, window_bounds = array<i64: 256, 16>}, {pipeline_mode = #tpu.pipeline_mode<synchronous>, transform_indices = @transform_1, window_bounds = array<i64: 56, 16>}, {pipeline_mode = #tpu.pipeline_mode<synchronous>, transform_indices = @transform_2, window_bounds = array<i64: 56, 1>}, {pipeline_mode = #tpu.pipeline_mode<synchronous>, transform_indices = @transform_3, window_bounds = array<i64: 32, 56>}, {pipeline_mode = #tpu.pipeline_mode<synchronous>, transform_indices = @transform_4, window_bounds = array<i64: 32, 1>}, {pipeline_mode = #tpu.pipeline_mode<synchronous>, transform_indices = @transform_5, window_bounds = array<i64: 1, 32>}, {pipeline_mode = #tpu.pipeline_mode<synchronous>, transform_indices = @transform_6, window_bounds = array<i64: 1, 1>}, {transform_indices = @transform_7, window_bounds = array<i64: 1, 256>}]} {
    %c0 = arith.constant 0 : index
    %c0_0 = arith.constant 0 : index
    %0 = vector.load %arg1[%c0, %c0_0] : memref<256x16xf32, #tpu.memory_space<vmem>>, vector<256x16xf32>
    %1 = tpu.transpose %0, [1, 0] : vector<256x16xf32> -> vector<16x256xf32>
    %2 = arith.truncf %1 : vector<16x256xf32> to vector<16x256xbf16>
    %c0_1 = arith.constant 0 : index
    %c0_2 = arith.constant 0 : index
    %3 = vector.load %arg2[%c0_1, %c0_2] : memref<56x16xbf16, #tpu.memory_space<vmem>>, vector<56x16xbf16>
    %cst = arith.constant dense<0.000000e+00> : vector<56x256xf32>
    %4 = tpu.matmul %3, %2, %cst {dimension_numbers = #tpu.dot_dimension_numbers<[1], [0], [0], [1], [0, 0, 1, 1], [], []>} : vector<56x16xbf16>, vector<16x256xbf16>, vector<56x256xf32> -> vector<56x256xf32>
    %c0_3 = arith.constant 0 : index
    %c0_4 = arith.constant 0 : index
    %5 = vector.load %arg3[%c0_3, %c0_4] : memref<56x1xf32, #tpu.memory_space<vmem>>, vector<56x1xf32>
    %6 = vector.broadcast %5 : vector<56x1xf32> to vector<56x256xf32>
    %7 = arith.addf %4, %6 : vector<56x256xf32>
    %cst_5 = arith.constant 0.000000e+00 : f32
    %8 = vector.broadcast %cst_5 : f32 to vector<56x256xf32>
    %9 = arith.maximumf %7, %8 : vector<56x256xf32>
    %c0_6 = arith.constant 0 : index
    %c0_7 = arith.constant 0 : index
    %10 = vector.load %arg4[%c0_6, %c0_7] : memref<32x56xbf16, #tpu.memory_space<vmem>>, vector<32x56xbf16>
    %11 = arith.truncf %9 : vector<56x256xf32> to vector<56x256xbf16>
    %cst_8 = arith.constant dense<0.000000e+00> : vector<32x256xf32>
    %12 = tpu.matmul %10, %11, %cst_8 {dimension_numbers = #tpu.dot_dimension_numbers<[1], [0], [0], [1], [0, 0, 1, 1], [], []>} : vector<32x56xbf16>, vector<56x256xbf16>, vector<32x256xf32> -> vector<32x256xf32>
    %c0_9 = arith.constant 0 : index
    %c0_10 = arith.constant 0 : index
    %13 = vector.load %arg5[%c0_9, %c0_10] : memref<32x1xf32, #tpu.memory_space<vmem>>, vector<32x1xf32>
    %14 = vector.broadcast %13 : vector<32x1xf32> to vector<32x256xf32>
    %15 = arith.addf %12, %14 : vector<32x256xf32>
    %cst_11 = arith.constant 0.000000e+00 : f32
    %16 = vector.broadcast %cst_11 : f32 to vector<32x256xf32>
    %17 = arith.maximumf %15, %16 : vector<32x256xf32>
    %c0_12 = arith.constant 0 : index
    %c0_13 = arith.constant 0 : index
    %18 = vector.load %arg6[%c0_12, %c0_13] : memref<1x32xbf16, #tpu.memory_space<vmem>>, vector<1x32xbf16>
    %19 = arith.truncf %17 : vector<32x256xf32> to vector<32x256xbf16>
    %cst_14 = arith.constant dense<0.000000e+00> : vector<1x256xf32>
    %20 = tpu.matmul %18, %19, %cst_14 {dimension_numbers = #tpu.dot_dimension_numbers<[1], [0], [0], [1], [0, 0, 1, 1], [], []>} : vector<1x32xbf16>, vector<32x256xbf16>, vector<1x256xf32> -> vector<1x256xf32>
    %c0_15 = arith.constant 0 : index
    %c0_16 = arith.constant 0 : index
    %21 = vector.load %arg7[%c0_15, %c0_16] : memref<1x1xf32, #tpu.memory_space<vmem>>, vector<1x1xf32>
    %22 = vector.broadcast %21 : vector<1x1xf32> to vector<1x256xf32>
    %23 = arith.addf %20, %22 : vector<1x256xf32>
    %c0_17 = arith.constant 0 : index
    %c0_18 = arith.constant 0 : index
    %24 = vector.load %arg8[%c0_17, %c0_18] : memref<1x256xf32, #tpu.memory_space<vmem>>, vector<1x256xf32>
    tpu.vector_store %arg8[%c0_17, %c0_18], %23 {strides = array<i32>} : memref<1x256xf32, #tpu.memory_space<vmem>>, vector<1x256xf32>,
    return
  }
  func.func @transform_0(%arg0: i32) -> (i32, i32) {
    %c0_i32 = arith.constant 0 : i32
    %c0_i32_0 = arith.constant 0 : i32
    return %arg0, %c0_i32 : i32, i32
  }
  func.func @transform_1(%arg0: i32) -> (i32, i32) {
    %c0_i32 = arith.constant 0 : i32
    %c0_i32_0 = arith.constant 0 : i32
    %c0_i32_1 = arith.constant 0 : i32
    return %c0_i32, %c0_i32_0 : i32, i32
  }
  func.func @transform_2(%arg0: i32) -> (i32, i32) {
    %c0_i32 = arith.constant 0 : i32
    %c0_i32_0 = arith.constant 0 : i32
    %c0_i32_1 = arith.constant 0 : i32
    return %c0_i32, %c0_i32_0 : i32, i32
  }
  func.func @transform_3(%arg0: i32) -> (i32, i32) {
    %c0_i32 = arith.constant 0 : i32
    %c0_i32_0 = arith.constant 0 : i32
    %c0_i32_1 = arith.constant 0 : i32
    return %c0_i32, %c0_i32_0 : i32, i32
  }
  func.func @transform_4(%arg0: i32) -> (i32, i32) {
    %c0_i32 = arith.constant 0 : i32
    %c0_i32_0 = arith.constant 0 : i32
    %c0_i32_1 = arith.constant 0 : i32
    return %c0_i32, %c0_i32_0 : i32, i32
  }
  func.func @transform_5(%arg0: i32) -> (i32, i32) {
    %c0_i32 = arith.constant 0 : i32
    %c0_i32_0 = arith.constant 0 : i32
    %c0_i32_1 = arith.constant 0 : i32
    return %c0_i32, %c0_i32_0 : i32, i32
  }
  func.func @transform_6(%arg0: i32) -> (i32, i32) {
    %c0_i32 = arith.constant 0 : i32
    %c0_i32_0 = arith.constant 0 : i32
    %c0_i32_1 = arith.constant 0 : i32
    return %c0_i32, %c0_i32_0 : i32, i32
  }
  func.func @transform_7(%arg0: i32) -> (i32, i32) {
    %c0_i32 = arith.constant 0 : i32
    %c0_i32_0 = arith.constant 0 : i32
    return %c0_i32, %arg0 : i32, i32
  }
}

</mosaic_0001>

<bundles_post_ra>
// kernel: cnn_anomaly_forward.1
= control target key start
LH: loop header
LB: loop body
LE: loop exit
PB: predicated region body
PF: predicated region fallthrough
CT: control target
= control target key end

     0   :  { %v566_v12 = vmov 0   ;;  %vm194_vm0 = vcmask 130048   ;;  %vm345_vm1 = vcmask 1043456   ;;  %vm338_vm2 = vcmask 457728   ;;  %s773_s0 = inlined_call_operand.vmem [shape: f32[256,16], index: 0, kind: input, shape index: {}]   ;;  %s774_s1 = inlined_call_operand.vmem [shape: bf16[56,16], index: 1, kind: input, shape index: {}]   ;;  %s775_s2 = inlined_call_operand.vmem [shape: f32[56,1], index: 2, kind: input, shape index: {}]   ;;  %s776_s6 = inlined_call_operand.<no memory space> [shape: f32[1,1], index: 6, kind: input, shape index: {}]   ;;  %s777_s4 = inlined_call_operand.vmem [shape: f32[32,1], index: 4, kind: input, shape index: {}]   ;;  %s778_s3 = inlined_call_operand.vmem [shape: bf16[32,56], index: 3, kind: input, shape index: {}]   ;;  %s779_s5 = inlined_call_operand.vmem [shape: bf16[1,32], index: 5, kind: input, shape index: {}]   ;;  %s780_s7 = inlined_call_operand.vmem [shape: f32[1,256], index: 7, kind: output, shape index: {}]  }
   0x1   :  { %v29_v0 = vld [vmem:[%s773_s0] sm:$0xff]  ;;  %v30_v2 = vld [vmem:[%s773_s0 + $0x8] sm:$0xff]  ;;  %v31_v6 = vld [vmem:[%s773_s0 + $0x10] sm:$0xff]  ;;  %239 = vmatprep.mubr.bf16.mxu0 %v566_v12  ;;  %558 = vset.pattern.permute.xlu1 %v566_v12  ;;  %v12_v34 = vstv %s776_s6  ;;  %vm428_vm3 = vcmask 261120  }
   0x2   :  { %v45_v1 = vld [vmem:[%s773_s0 + $0x80] sm:$0xff]  ;;  %v46_v4 = vld [vmem:[%s773_s0 + $0x88] sm:$0xff]  ;;  %v47_v7 = vld [vmem:[%s773_s0 + $0x90] sm:$0xff]  ;;  %384 = vmatprep.mubr.bf16.mxu1 %v566_v12  ;;  %13 = vst [vmem:[#allocation2] sm:$0x1] %v12_v34 }
   0x3   :  { %v516_v3 = vpack.i.bf16 %v29_v0, %v45_v1  ;;  %v518_v5 = vpack.i.bf16 %v30_v2, %v46_v4  ;;  %v520_v8 = vpack.i.bf16 %v31_v6, %v47_v7  ;;  %v32_v9 = vld [vmem:[%s773_s0 + $0x18] sm:$0xff]  ;;  %v33_v11 = vld [vmem:[%s773_s0 + $0x20] sm:$0xff]  ;;  %v34_v16 = vld [vmem:[%s773_s0 + $0x28] sm:$0xff] }
   0x4   :  { %v48_v10 = vld [vmem:[%s773_s0 + $0x98] sm:$0xff]  ;;  %v49_v14 = vld [vmem:[%s773_s0 + $0xa0] sm:$0xff]  ;;  %v50_v17 = vld [vmem:[%s773_s0 + $0xa8] sm:$0xff] }
   0x5   :  { %517 = vxpose.xlu0.b32.start [1/16] (narrow) %v516_v3, 16  ;;  %v522_v13 = vpack.i.bf16 %v32_v9, %v48_v10  ;;  %v524_v15 = vpack.i.bf16 %v33_v11, %v49_v14  ;;  %v526_v18 = vpack.i.bf16 %v34_v16, %v50_v17  ;;  %v35_v19 = vld [vmem:[%s773_s0 + $0x30] sm:$0xff]  ;;  %v36_v22 = vld [vmem:[%s773_s0 + $0x38] sm:$0xff]  ;;  %v37_v25 = vld [vmem:[%s773_s0 + $0x40] sm:$0xff] }
   0x6   :  { %v51_v20 = vld [vmem:[%s773_s0 + $0xb0] sm:$0xff]  ;;  %v52_v23 = vld [vmem:[%s773_s0 + $0xb8] sm:$0xff]  ;;  %v53_v26 = vld [vmem:[%s773_s0 + $0xc0] sm:$0xff] }
   0x7   :  { %v528_v21 = vpack.i.bf16 %v35_v19, %v51_v20  ;;  %v530_v24 = vpack.i.bf16 %v36_v22, %v52_v23  ;;  %v532_v27 = vpack.i.bf16 %v37_v25, %v53_v26  ;;  %v38_v28 = vld [vmem:[%s773_s0 + $0x48] sm:$0xff]  ;;  %v39_v31 = vld [vmem:[%s773_s0 + $0x50] sm:$0xff]  ;;  %v138_v36 = vld [vmem:[%s775_s2 + $0x20] sm:$0xff] }
   0x8   :  { %v54_v29 = vld [vmem:[%s773_s0 + $0xc8] sm:$0xff]  ;;  %v55_v32 = vld [vmem:[%s773_s0 + $0xd0] sm:$0xff]  ;;  %v40_v37 = vld [vmem:[%s773_s0 + $0x58] sm:$0xff] }
   0x9   :  { %519 = vxpose.xlu0.b32.cont [2/16] (narrow) %v518_v5, 16  ;;  %v534_v30 = vpack.i.bf16 %v38_v28, %v54_v29  ;;  %v140_v33 = vld [vmem:[%s775_s2 + $0x30] sm:$0xff]  ;;  %v536_v35 = vpack.i.bf16 %v39_v31, %v55_v32  ;;  %v56_v38 = vld [vmem:[%s773_s0 + $0xd8] sm:$0xff]  ;;  %v139_v40 = vld [vmem:[%s775_s2 + $0x28] sm:$0xff] }
   0xa   :  { %173 = vperm.xlu1 %558, %v140_v33   ;;  %v538_v39 = vpack.i.bf16 %v40_v37, %v56_v38  ;;  %v41_v41 = vld [vmem:[%s773_s0 + $0x60] sm:$0xff]  ;;  %v136_v44 = vld [vmem:[%s775_s2 + $0x10] sm:$0xff]  ;;  %v42_v45 = vld [vmem:[%s773_s0 + $0x68] sm:$0xff] }
   0xb   :  { %v57_v42 = vld [vmem:[%s773_s0 + $0xe0] sm:$0xff]  ;;  %v58_v46 = vld [vmem:[%s773_s0 + $0xe8] sm:$0xff]  ;;  %v137_v48 = vld [vmem:[%s775_s2 + $0x18] sm:$0xff] }
   0xc   :  { %v540_v43 = vpack.i.bf16 %v41_v41, %v57_v42  ;;  %v542_v47 = vpack.i.bf16 %v42_v45, %v58_v46  ;;  %v43_v49 = vld [vmem:[%s773_s0 + $0x70] sm:$0xff]  ;;  %v134_v52 = vld [vmem:[%s775_s2] sm:$0xff]  ;;  %v44_v53 = vld [vmem:[%s773_s0 + $0x78] sm:$0xff] }
   0xd   :  { %521 = vxpose.xlu0.b32.cont [3/16] (narrow) %v520_v8, 16  ;;  %v59_v50 = vld [vmem:[%s773_s0 + $0xf0] sm:$0xff]  ;;  %v60_v54 = vld [vmem:[%s773_s0 + $0xf8] sm:$0xff]  ;;  %v135_v56 = vld [vmem:[%s775_s2 + $0x8] sm:$0xff] }
   0xe   :  { %163 = vperm.xlu1 %558, %v138_v36   ;;  %v544_v51 = vpack.i.bf16 %v43_v49, %v59_v50  ;;  %v546_v55 = vpack.i.bf16 %v44_v53, %v60_v54  ;;  %v306_v57 = vld [vmem:[%s777_s4 + $0x10] sm:$0xff]  ;;  %v307_v58 = vld [vmem:[%s777_s4 + $0x18] sm:$0xff]  ;;  %v304_v59 = vld [vmem:[%s777_s4] sm:$0xff] }
   0xf   :  { %v305_v60 = vld [vmem:[%s777_s4 + $0x8] sm:$0xff]  ;;  %v418_v61 = vld [vmem:[#allocation2] sm:$0x1]  ;;  %v562_v8 = vld [vmem:[%s774_s1 + $0x10] sm:$0xff]  }
  0x10   :  { %v560_v6 = vld [vmem:[%s774_s1] sm:$0xff]   ;;  %v561_v7 = vld [vmem:[%s774_s1 + $0x8] sm:$0xff]   ;;  %v563_v9 = vld [vmem:[%s774_s1 + $0x18] ss:$0 sps:$4 sm:$0xff]  }
  0x11   :  { %523 = vxpose.xlu0.b32.cont [4/16] (narrow) %v522_v13, 16 }
  0x12   :  { %168 = vperm.xlu1 %558, %v139_v40  }
  0x15   :  { %525 = vxpose.xlu0.b32.cont [5/16] (narrow) %v524_v15, 16 }
  0x16   :  { %153 = vperm.xlu1 %558, %v136_v44  }
  0x19   :  { %527 = vxpose.xlu0.b32.cont [6/16] (narrow) %v526_v18, 16 }
  0x1a   :  { %158 = vperm.xlu1 %558, %v137_v48  }
  0x1d   :  { %529 = vxpose.xlu0.b32.cont [7/16] (narrow) %v528_v21, 16 }
  0x1e   :  { %143 = vperm.xlu1 %558, %v134_v52  }
  0x21   :  { %531 = vxpose.xlu0.b32.cont [8/16] (narrow) %v530_v24, 16 }
  0x22   :  { %148 = vperm.xlu1 %558, %v135_v56  }
  0x25   :  { %533 = vxpose.xlu0.b32.cont [9/16] (narrow) %v532_v27, 16 }
  0x26   :  { %320 = vperm.xlu1 %558, %v306_v57  }
  0x29   :  { %535 = vxpose.xlu0.b32.cont [10/16] (narrow) %v534_v30, 16 }
  0x2a   :  { %325 = vperm.xlu1 %558, %v307_v58  }
  0x2d   :  { %537 = vxpose.xlu0.b32.cont [11/16] (narrow) %v536_v35, 16 }
  0x2e   :  { %310 = vperm.xlu1 %558, %v304_v59  }
  0x31   :  { %539 = vxpose.xlu0.b32.cont [12/16] (narrow) %v538_v39, 16 }
  0x32   :  { %315 = vperm.xlu1 %558, %v305_v60  }
  0x35   :  { %541 = vxpose.xlu0.b32.cont [13/16] (narrow) %v540_v43, 16 }
  0x36   :  { %421 = vperm.xlu1 %558, %v418_v61  }
  0x39   :  { %543 = vxpose.xlu0.b32.cont [14/16] (narrow) %v542_v47, 16 }
  0x3d   :  { %545 = vxpose.xlu0.b32.cont [15/16] (narrow) %v544_v51, 16 }
  0x41   :  { %547 = vxpose.xlu0.b32.end [16/16] (narrow) %v546_v55, 16 }
  0x6a   :  { %559 = vset.pattern.permute.xlu0 %v566_v12 }
  0x81   :  { %v548_v62 = vpop.trf.xlu0 }
  0x82   :  { %v549_v0 = vunpack.i.l.bf16 %v548_v62  ;;  %v552_v1 = vunpack.i.h.bf16 %v548_v62 }
  0x85   :  { %v553_v63 = vpop.trf.xlu0  ;;  %v174_v10 = vpop.permute.xlu1 %173 }
  0x86   :  { %v554_v2 = vunpack.i.l.bf16 %v553_v63  ;;  %v557_v3 = vunpack.i.h.bf16 %v553_v63 }
  0x88   :  { %v126_v4 = vpack.c.bf16 %v554_v2, %v549_v0  ;;  %v125_v5 = vpack.c.bf16 %v557_v3, %v552_v1 }
  0x89   :  { %v164_v13 = vpop.permute.xlu1 %163 }
  0x8a   :  { %221 = vmatprep.subr.bf16.mxu0 %v126_v4 }
  0x8b   :  { %222 = vmatpush1.bf16.msra.mxu0 %v125_v5 }
  0x8d   :  { %v169_v17 = vpop.permute.xlu1 %168 }
  0x8e   :  { %504 = vmatmul.mubr.msk.bf16.vlgmr.msra.gmra.mxu0 %vm194_vm0, %v560_v6 }
  0x8f   :  { %249 = vmatprep.mubr.bf16.mxu0 %v566_v12 }
  0x91   :  { %v154_v21 = vpop.permute.xlu1 %153 }
  0x95   :  { %v159_v25 = vpop.permute.xlu1 %158 }
  0x96   :  { %505 = vmatmul.mubr.msk.bf16.gmra.mxu0 %vm194_vm0, %v561_v7  ;;  %v564_v7 = vld [vmem:[%s778_s3] sm:$0xff]  }
  0x97   :  { %259 = vmatprep.mubr.bf16.mxu0 %v566_v12 }
  0x99   :  { %v144_v31 = vpop.permute.xlu1 %143 }
  0x9d   :  { %v149_v47 = vpop.permute.xlu1 %148 }
  0x9e   :  { %506 = vmatmul.mubr.msk.bf16.gmra.mxu0 %vm194_vm0, %v562_v8  ;;  %v565_v8 = vld [vmem:[%s778_s3 + $0x8] sm:$0xff]  }
  0x9f   :  { %269 = vmatprep.mubr.bf16.mxu0 %v566_v12 }
  0xa6   :  { %507 = vmatmul.mubr.msk.bf16.gmra.mxu0 %vm194_vm0, %v563_v9  ;;  %v321_v9 = vpop.permute.xlu1 %320 }
 0x14e   :  { %v241_v11 = vpop.f32.mrf.mxu0 }
 0x14f   :  { %v242_v63 = vadd.f32 %v241_v11, %v144_v31 }
 0x150   :  { %v243_v14 = vpop.f32.mrf.mxu0 }
 0x151   :  { %v244_v56 = vadd.f32 %v243_v14, %v144_v31  ;;  %v278_v5 = vmax.f32 %v242_v63, 0.0 }
 0x152   :  { %v245_v15 = vpop.f32.mrf.mxu0 }
 0x153   :  { %v246_v58 = vadd.f32 %v245_v15, %v149_v47  ;;  %v279_v1 = vmax.f32 %v244_v56, 0.0 }
 0x154   :  { %v247_v16 = vpop.f32.mrf.mxu0 }
 0x155   :  { %v248_v50 = vadd.f32 %v247_v16, %v149_v47  ;;  %v280_v2 = vmax.f32 %v246_v58, 0.0 }
 0x156   :  { %v251_v18 = vpop.f32.mrf.mxu0 }
 0x157   :  { %v252_v54 = vadd.f32 %v251_v18, %v154_v21  ;;  %v281_v61 = vmax.f32 %v248_v50, 0.0  ;;  %v296_v6 = vpack.c.bf16 %v280_v2, %v278_v5 }
 0x158   :  { %v253_v19 = vpop.f32.mrf.mxu0 }
 0x159   :  { %v254_v44 = vadd.f32 %v253_v19, %v154_v21  ;;  %v282_v0 = vmax.f32 %v252_v54, 0.0  ;;  %v297_v4 = vpack.c.bf16 %v281_v61, %v279_v1 }
 0x15a   :  { %v255_v20 = vpop.f32.mrf.mxu0 }
 0x15b   :  { %v256_v48 = vadd.f32 %v255_v20, %v159_v25  ;;  %v283_v57 = vmax.f32 %v254_v44, 0.0  ;;  %v567_v44 = vmov 1966171168  }
 0x15c   :  { %v257_v22 = vpop.f32.mrf.mxu0 }
 0x15d   :  { %v258_v38 = vadd.f32 %v257_v22, %v159_v25  ;;  %v284_v59 = vmax.f32 %v256_v48, 0.0 }
 0x15e   :  { %v261_v23 = vpop.f32.mrf.mxu0 }
 0x15f   :  { %v262_v42 = vadd.f32 %v261_v23, %v164_v13  ;;  %v285_v51 = vmax.f32 %v258_v38, 0.0  ;;  %v298_v3 = vpack.c.bf16 %v284_v59, %v282_v0 }
 0x160   :  { %v263_v24 = vpop.f32.mrf.mxu0 }
 0x161   :  { %v264_v33 = vadd.f32 %v263_v24, %v164_v13  ;;  %v286_v55 = vmax.f32 %v262_v42, 0.0  ;;  %v299_v62 = vpack.c.bf16 %v285_v51, %v283_v57  ;;  %v424_v42 = vlaneseq }
 0x162   :  { %v265_v26 = vpop.f32.mrf.mxu0 }
 0x163   :  { %v266_v36 = vadd.f32 %v265_v26, %v169_v17  ;;  %v287_v45 = vmax.f32 %v264_v33, 0.0  ;;  %vm493_vm4 = vcmp.lt.s32.totalorder %v424_v42, 256 }
 0x164   :  { %v267_v27 = vpop.f32.mrf.mxu0 }
 0x165   :  { %v268_v29 = vadd.f32 %v267_v27, %v169_v17  ;;  %v288_v49 = vmax.f32 %v266_v36, 0.0 }
 0x166   :  { %v271_v28 = vpop.f32.mrf.mxu0 }
 0x167   :  { %v272_v30 = vadd.f32 %v271_v28, %v174_v10  ;;  %v289_v39 = vmax.f32 %v268_v29, 0.0  ;;  %v300_v60 = vpack.c.bf16 %v288_v49, %v286_v55 }
 0x168   :  { %v273_v32 = vpop.f32.mrf.mxu0 }
 0x169   :  { %v290_v34 = vmax.f32 %v272_v30, 0.0  ;;  %v274_v35 = vadd.f32 %v273_v32, %v174_v10  ;;  %v301_v52 = vpack.c.bf16 %v289_v39, %v287_v45  ;;  %v326_v10 = vpop.permute.xlu1 %325  ;;  %v477_v45 = vunpack.c.l.s4 %v567_v44 }
 0x16a   :  { %v275_v37 = vpop.f32.mrf.mxu0 }
 0x16b   :  { %v302_v40 = vpack.c.bf16 %v290_v34, %v290_v34  ;;  %v291_v41 = vmax.f32 %v274_v35, 0.0  ;;  %v478_v48 = vunpack.c.0.s8 %v477_v45 }
 0x16c   :  { %v276_v43 = vpop.f32.mrf.mxu0 }
 0x16d   :  { %v303_v46 = vpack.c.bf16 %v291_v41, %v291_v41  ;;  %v347_v53 = vsel %vm345_vm1, %v302_v40, 0  ;;  %v311_v15 = vpop.permute.xlu1 %310  ;;  %v413_v41 = vld [vmem:[%s779_s5] sm:$0x1]  ;;  %v425_v43 = vshrl.u32 %v424_v42, 7 }
 0x16f   :  { %510 = vmatprep.subr.msk.bf16.mxu1 %vm345_vm1, %v303_v46  ;;  %v426_v46 = vsub.s32 0, %v425_v43  ;;  %v481_v54 = vsub.s32 %v478_v48, %v425_v43 }
 0x170   :  { %361 = vmatpush1.bf16.msra.mxu1 %v347_v53 }
 0x171   :  { %362 = vmatprep.subr.bf16.mxu1 %v301_v52  ;;  %v316_v19 = vpop.permute.xlu1 %315 }
 0x174   :  { %363 = vmatpush1.bf16.msra.mxu1 %v300_v60 }
 0x175   :  { %364 = vmatprep.subr.bf16.mxu1 %v299_v62  ;;  %v422_v47 = vpop.permute.xlu1 %421 }
 0x176   :  { %v427_v50 = vrot.slane %v422_v47, %v426_v46 }
 0x178   :  { %365 = vmatpush1.bf16.msra.mxu1 %v298_v3 }
 0x179   :  { %366 = vmatprep.subr.bf16.mxu1 %v297_v4 }
 0x17c   :  { %367 = vmatpush1.bf16.msra.mxu1 %v296_v6 }
 0x17f   :  { %511 = vmatmul.mubr.msk.bf16.vlgmr.msra.gmra.mxu1 %vm338_vm2, %v564_v7 }
 0x180   :  { %394 = vmatprep.mubr.bf16.mxu1 %v566_v12 }
 0x187   :  { %512 = vmatmul.mubr.msk.bf16.gmra.mxu1 %vm338_vm2, %v565_v8 }
 0x188   :  { %464 = vmatprep.mubr.bf16.mxu1 %v566_v12 }
 0x23f   :  { %v386_v11 = vpop.f32.mrf.mxu1 }
 0x240   :  { %v387_v32 = vadd.f32 %v386_v11, %v311_v15 }
 0x241   :  { %v388_v13 = vpop.f32.mrf.mxu1 }
 0x242   :  { %v389_v26 = vadd.f32 %v388_v13, %v311_v15  ;;  %v405_v39 = vmax.f32 %v387_v32, 0.0 }
 0x243   :  { %v390_v14 = vpop.f32.mrf.mxu1 }
 0x244   :  { %v391_v28 = vadd.f32 %v390_v14, %v316_v19  ;;  %v406_v34 = vmax.f32 %v389_v26, 0.0 }
 0x245   :  { %v392_v16 = vpop.f32.mrf.mxu1 }
 0x246   :  { %v393_v21 = vadd.f32 %v392_v16, %v316_v19  ;;  %v407_v36 = vmax.f32 %v391_v28, 0.0 }
 0x247   :  { %v396_v17 = vpop.f32.mrf.mxu1 }
 0x248   :  { %v397_v24 = vadd.f32 %v396_v17, %v321_v9  ;;  %v408_v29 = vmax.f32 %v393_v21, 0.0  ;;  %v414_v40 = vpack.c.bf16 %v407_v36, %v405_v39 }
 0x249   :  { %v398_v18 = vpop.f32.mrf.mxu1 }
 0x24a   :  { %v399_v22 = vadd.f32 %v398_v18, %v321_v9  ;;  %v409_v33 = vmax.f32 %v397_v24, 0.0  ;;  %v415_v38 = vpack.c.bf16 %v408_v29, %v406_v34 }
 0x24b   :  { %v400_v20 = vpop.f32.mrf.mxu1 }
 0x24c   :  { %v401_v23 = vadd.f32 %v400_v20, %v326_v10  ;;  %v410_v30 = vmax.f32 %v399_v22, 0.0 }
 0x24d   :  { %v402_v25 = vpop.f32.mrf.mxu1 }
 0x24e   :  { %v403_v27 = vadd.f32 %v402_v25, %v326_v10  ;;  %v411_v12 = vmax.f32 %v401_v23, 0.0 }
 0x250   :  { %v412_v31 = vmax.f32 %v403_v27, 0.0  ;;  %v416_v37 = vpack.c.bf16 %v411_v12, %v409_v33 }
 0x252   :  { %v417_v35 = vpack.c.bf16 %v412_v31, %v410_v30 }
 0x254   :  { %444 = vmatprep.subr.bf16.mxu1 %v417_v35 }
 0x255   :  { %445 = vmatpush1.bf16.msra.mxu1 %v416_v37 }
 0x256   :  { %446 = vmatprep.subr.bf16.mxu1 %v415_v38 }
 0x259   :  { %447 = vmatpush1.bf16.msra.mxu1 %v414_v40 }
 0x25c   :  { %513 = vmatmul.mubr.msk.bf16.vlgmr.msra.gmra.mxu1 %vm428_vm3, %v413_v41 }
 0x31c   :  { %v466_v49 = vpop.f32.mrf.mxu1 }
 0x31d   :  { %v467_v52 = vadd.f32 %v466_v49, %v427_v50 }
 0x31e   :  { %v468_v51 = vpop.f32.mrf.mxu1 }
 0x31f   :  { %v469_v53 = vadd.f32 %v468_v51, %v427_v50 }
 0x320   :  { %v470_v55 = vpop.f32.mrf.mxu1 }
 0x321   :  { %v475_v56 = vcombine.low %v467_v52, %v469_v53 }
 0x322   :  { %v471_v57 = vpop.f32.mrf.mxu1 }
 0x323   :  { %v482_v58 = vrot.slane %v475_v56, %v481_v54 }
 0x325   :  { %v489_v59 = vrot.slane %v482_v58, %v481_v54 }
 0x327   :  { %495 = vst.msk [vmem:[%s780_s7] sm:$0x3] %vm493_vm4, %v489_v59 }

</bundles_post_ra>
